<compile_context>
chip_gen: v5e
topology: v5e:2x2
jax: 0.10.0
libtpu: 0.0.40
codegen_flags: <defaults>
</compile_context>

<pallas_src>
import functools
import math

import jax
import jax.numpy as jnp
from jax.experimental import pallas as pl
from jax.experimental.pallas import tpu as pltpu


def _label_smoothing_kernel(x_ref, t_ref, o_ref, *, n_rows, tile_rows,
                            padding_idx, confidence, smooth_val, row_const,
                            need_tail_mask):
    x = x_ref[...].astype(jnp.float32)          # (tile_rows, V) log-probs
    tgt = t_ref[...]                            # (tile_rows, 1) int32 targets

    # Data-dependent part of sum(td * x) for a valid (non-pad) row:
    #   smooth*rowsum(x) + (conf - smooth)*x[t] - smooth*x[pad]
    # Coefficients are exact zeros in the smoothing==0 / smoothing==1 cases,
    # reproducing kl_div's "drop where target prob == 0" behavior.
    col = jax.lax.broadcasted_iota(jnp.int32, x.shape, 1)
    sum_x = jnp.sum(x, axis=1, keepdims=True)                                # (tr,1)
    x_t = jnp.sum(jnp.where(col == tgt, x, jnp.float32(0.0)),
                  axis=1, keepdims=True)                                     # (tr,1)
    x_pad = x[:, padding_idx:padding_idx + 1]                                # (tr,1) static slice

    cross = (jnp.float32(smooth_val) * sum_x
             + jnp.float32(confidence - smooth_val) * x_t
             - jnp.float32(smooth_val) * x_pad)

    contrib = jnp.float32(row_const) - cross                                 # (tr,1)

    # Row-level masking only (column-1 width): pad rows and (optionally) the
    # out-of-range tail of the last tile.
    row_ok = tgt != padding_idx
    if need_tail_mask:
        i = pl.program_id(0)
        row_idx = jax.lax.broadcasted_iota(jnp.int32, tgt.shape, 0) + i * tile_rows
        row_ok = jnp.logical_and(row_ok, row_idx < n_rows)

    contrib = jnp.where(row_ok, contrib, jnp.float32(0.0))
    o_ref[...] = jnp.sum(contrib).reshape(1, 1, 1)


def label_smoothing_loss(x, target, *, size, padding_idx, smoothing,
                         tile_rows=1024):
    """x: (N, size) log-probabilities; target: (N,) int class ids. Returns scalar loss."""
    n, v = x.shape
    assert v == size, "x.shape[1] must equal size"
    assert size > 2, "size must be > 2 (smoothing mass split over size-2 classes)"

    confidence = 1.0 - smoothing
    smooth_val = smoothing / (size - 2)

    # sum td*log(td) over the nonzero entries of a valid row: compile-time constant.
    row_const = 0.0
    if confidence > 0.0:
        row_const += confidence * math.log(confidence)
    if smooth_val > 0.0:
        row_const += (size - 2) * smooth_val * math.log(smooth_val)

    # Generation-aware VMEM budgeting (v7x: 64 MiB/TC, v5e/v6e: 128 MiB).
    try:
        vmem_cap = int(pltpu.get_tpu_info().vmem_capacity_bytes)
    except Exception:
        vmem_cap = 64 * 1024 * 1024          # conservative (v7x per-TensorCore)
    vmem_budget_per_buf = vmem_cap // 8      # 8 MiB on v7x, 16 MiB on v5e/v6e

    # Sublane rounding: 8 for 4-byte dtypes, 16 for 2-byte (bf16) inputs.
    sub = 16 if x.dtype.itemsize == 2 else 8
    bytes_per_row = v * x.dtype.itemsize
    max_rows = max(sub, (vmem_budget_per_buf // bytes_per_row) // sub * sub)
    rows_rounded = ((n + sub - 1) // sub) * sub
    tr = min(tile_rows, max_rows, rows_rounded)
    tr = max(sub, (tr // sub) * sub)

    num_steps = pl.cdiv(n, tr)
    need_tail_mask = (n % tr) != 0

    t2 = target.astype(jnp.int32).reshape(n, 1)

    kernel = functools.partial(
        _label_smoothing_kernel,
        n_rows=n, tile_rows=tr, padding_idx=padding_idx,
        confidence=confidence, smooth_val=smooth_val,
        row_const=row_const, need_tail_mask=need_tail_mask)

    # Size the VMEM limit to actual need (+headroom), not the whole chip.
    tile_bytes = tr * bytes_per_row
    needed = 2 * tile_bytes + 2 * tr * 4 + (4 << 20)   # double-buffered x + targets + slack
    vmem_limit = int(min(max(2 * needed, 16 << 20), vmem_cap * 3 // 4))

    partials = pl.pallas_call(
        kernel,
        out_shape=jax.ShapeDtypeStruct((num_steps, 1, 1), jnp.float32),
        grid_spec=pltpu.PrefetchScalarGridSpec(
            num_scalar_prefetch=0,
            grid=(num_steps,),
            in_specs=[
                pl.BlockSpec((tr, v), lambda i: (i, 0)),
                pl.BlockSpec((tr, 1), lambda i: (i, 0)),
            ],
            # Independent per-step partial sums -> the row axis is truly
            # parallel (v7x megacore); summed on the host below.
            out_specs=pl.BlockSpec((1, 1, 1), lambda i: (i, 0, 0)),
        ),
        compiler_params=pltpu.CompilerParams(
            dimension_semantics=("parallel",),
            vmem_limit_bytes=vmem_limit,
        ),
    )(x, t2)

    return jnp.sum(partials)


if __name__ == "__main__":
    size = 128          # vocab size (lane-dense last dim)
    padding_idx = 0
    smoothing = 0.1
    batch, seq = 2, 8
    n = batch * seq

    key = jax.random.PRNGKey(0)
    k1, k2 = jax.random.split(key)
    logits = jax.random.normal(k1, (n, size), dtype=jnp.float32)
    x = jax.nn.log_softmax(logits, axis=-1)                  # model log-probs
    target = jax.random.randint(k2, (n,), 0, size, dtype=jnp.int32)
    target = target.at[3].set(padding_idx)                   # exercise pad-row mask

    loss = label_smoothing_loss(x, target, size=size,
                                padding_idx=padding_idx, smoothing=smoothing)
    loss = jax.block_until_ready(loss)

    # Pure-JAX reference of the exact torch semantics.
    confidence = 1.0 - smoothing
    smooth = smoothing / (size - 2)
    td = jnp.full((n, size), smooth, dtype=jnp.float32)
    td = td.at[jnp.arange(n), target].set(confidence)
    td = td.at[:, padding_idx].set(0.0)
    td = jnp.where((target == padding_idx)[:, None], 0.0, td)
    safe_log = jnp.log(jnp.where(td > 0, td, 1.0))
    ref = jnp.sum(jnp.where(td > 0, td * (safe_log - x), 0.0))

    assert jnp.allclose(loss, ref, rtol=1e-5, atol=1e-4), (loss, ref)
    print("KERNEL_OK")
</pallas_src>

<mosaic_0001>
module attributes {stable_mosaic.version = 11 : i64} {
  func.func @_label_smoothing_kernel(%arg0: i32, %arg1: memref<16x128xf32, #tpu.memory_space<vmem>>, %arg2: memref<16x1xi32, #tpu.memory_space<vmem>>, %arg3: memref<1x1x1xf32, #tpu.memory_space<vmem>>) attributes {dimension_semantics = [#tpu.dimension_semantics<parallel>], iteration_bounds = array<i64: 1>, scalar_prefetch = 0 : i64, scratch_operands = 0 : i64, tpu.core_type = #tpu.core_type<tc>, window_params = [{transform_indices = @transform_0, window_bounds = array<i64: 16, 128>}, {transform_indices = @transform_1, window_bounds = array<i64: 16, 1>}, {transform_indices = @transform_2, window_bounds = array<i64: 1, 1, 1>}]} {
    %c0 = arith.constant 0 : index
    %c0_0 = arith.constant 0 : index
    %0 = vector.load %arg1[%c0, %c0_0] : memref<16x128xf32, #tpu.memory_space<vmem>>, vector<16x128xf32>
    %c0_1 = arith.constant 0 : index
    %c0_2 = arith.constant 0 : index
    %1 = vector.load %arg2[%c0_1, %c0_2] : memref<16x1xi32, #tpu.memory_space<vmem>>, vector<16x1xi32>
    %2 = tpu.iota {dimensions = array<i32: 1>} : vector<16x128xi32>
    %cst = arith.constant dense<0.000000e+00> : vector<16xf32>
    %3 = vector.multi_reduction <add>, %0, %cst [1] : vector<16x128xf32> to vector<16xf32>
    %4 = vector.shape_cast %3 : vector<16xf32> to vector<16x1xf32>
    %5 = vector.broadcast %1 : vector<16x1xi32> to vector<16x128xi32>
    %6 = arith.cmpi eq, %2, %5 : vector<16x128xi32>
    %cst_3 = arith.constant 0.000000e+00 : f32
    %7 = vector.broadcast %cst_3 : f32 to vector<16x128xf32>
    %8 = arith.select %6, %0, %7 : vector<16x128xi1>, vector<16x128xf32>
    %cst_4 = arith.constant dense<0.000000e+00> : vector<16xf32>
    %9 = vector.multi_reduction <add>, %8, %cst_4 [1] : vector<16x128xf32> to vector<16xf32>
    %10 = vector.shape_cast %9 : vector<16xf32> to vector<16x1xf32>
    %11 = vector.extract_strided_slice %0 {offsets = [0, 0], sizes = [16, 1], strides = [1, 1]} : vector<16x128xf32> to vector<16x1xf32>
    %cst_5 = arith.constant 7.93650805E-4 : f32
    %12 = vector.broadcast %cst_5 : f32 to vector<16x1xf32>
    %13 = arith.mulf %12, %4 : vector<16x1xf32>
    %cst_6 = arith.constant 0.89920634 : f32
    %14 = vector.broadcast %cst_6 : f32 to vector<16x1xf32>
    %15 = arith.mulf %14, %10 : vector<16x1xf32>
    %16 = arith.addf %13, %15 : vector<16x1xf32>
    %cst_7 = arith.constant 7.93650805E-4 : f32
    %17 = vector.broadcast %cst_7 : f32 to vector<16x1xf32>
    %18 = arith.mulf %17, %11 : vector<16x1xf32>
    %19 = arith.subf %16, %18 : vector<16x1xf32>
    %cst_8 = arith.constant -0.808711171 : f32
    %20 = vector.broadcast %cst_8 : f32 to vector<16x1xf32>
    %21 = arith.subf %20, %19 : vector<16x1xf32>
    %c0_i32 = arith.constant 0 : i32
    %22 = vector.broadcast %c0_i32 : i32 to vector<16x1xi32>
    %23 = arith.cmpi ne, %1, %22 : vector<16x1xi32>
    %cst_9 = arith.constant 0.000000e+00 : f32
    %24 = vector.broadcast %cst_9 : f32 to vector<16x1xf32>
    %25 = arith.select %23, %21, %24 : vector<16x1xi1>, vector<16x1xf32>
    %26 = vector.shape_cast %25 : vector<16x1xf32> to vector<1x16x1xf32>
    %cst_10 = arith.constant dense<0.000000e+00> : vector<1xf32>
    %27 = vector.multi_reduction <add>, %26, %cst_10 [1, 2] : vector<1x16x1xf32> to vector<1xf32>
    %28 = vector.shape_cast %27 : vector<1xf32> to vector<1x1x1xf32>
    %29 = vector.extract %28[0, 0, 0] : f32 from vector<1x1x1xf32>
    %30 = vector.broadcast %29 : f32 to vector<1x1x1xf32>
    %c0_11 = arith.constant 0 : index
    %c0_12 = arith.constant 0 : index
    %c0_13 = arith.constant 0 : index
    %31 = vector.load %arg3[%c0_11, %c0_12, %c0_13] : memref<1x1x1xf32, #tpu.memory_space<vmem>>, vector<1x1x1xf32>
    tpu.vector_store %arg3[%c0_11, %c0_12, %c0_13], %30 {strides = array<i32>} : memref<1x1x1xf32, #tpu.memory_space<vmem>>, vector<1x1x1xf32>,
    return
  }
  func.func @transform_0(%arg0: i32) -> (i32, i32) {
    %c0_i32 = arith.constant 0 : i32
    %c0_i32_0 = arith.constant 0 : i32
    return %arg0, %c0_i32 : i32, i32
  }
  func.func @transform_1(%arg0: i32) -> (i32, i32) {
    %c0_i32 = arith.constant 0 : i32
    %c0_i32_0 = arith.constant 0 : i32
    return %arg0, %c0_i32 : i32, i32
  }
  func.func @transform_2(%arg0: i32) -> (i32, i32, i32) {
    %c0_i32 = arith.constant 0 : i32
    %c0_i32_0 = arith.constant 0 : i32
    %c0_i32_1 = arith.constant 0 : i32
    return %arg0, %c0_i32, %c0_i32_0 : i32, i32, i32
  }
}

</mosaic_0001>

<bundles_post_ra>
// kernel: tpu_custom_call.1
= control target key start
LH: loop header
LB: loop body
LE: loop exit
PB: predicated region body
PF: predicated region fallthrough
CT: control target
= control target key end

     0   :  { %s147_s0 = inlined_call_operand.vmem [shape: f32[16,128], index: 0, kind: input, shape index: {}]   ;;  %s148_s1 = inlined_call_operand.vmem [shape: s32[16,1], index: 1, kind: input, shape index: {}]   ;;  %s149_s2 = inlined_call_operand.hbm [shape: f32[1,1,1], index: 2, kind: output, shape index: {}]  }
   0x1   :  { %v14_v0 = vld [vmem:[%s148_s1] sm:$0xff] }
   0x2   :  { %7 = vsyncpa [#allocation3], 0  ;;  %v115_v1 = vmov 0   ;;  %v15_v2 = vld [vmem:[%s148_s1 + $0x8] sm:$0xff]  ;;  %v12_v3 = vld [vmem:[%s147_s0] sm:$0xff]  ;;  %v16_v5 = vlaneseq  ;;  %vm48_vm2 = vcmp.ne.s32.totalorder %v14_v0, 0 }
   0x3   :  { %88 = vset.pattern.permute.xlu0 %v115_v1  ;;  %18 = vadd.xlane.f32.xlu1 %v12_v3  ;;  %v13_v4 = vld [vmem:[%s147_s0 + $0x8] sm:$0xff]  ;;  %v42_v14 = vmul.f32 0.0007936508, %v12_v3  ;;  %vm49_vm3 = vcmp.ne.s32.totalorder %v15_v2, 0  ;;  %vm52_vm4 = vcmask 7168   ;;  %s116_s0 = smov [#allocation2]  }
   0x4   :  { %23 = vperm.xlu0 %88, %v14_v0   ;;  %v17_v6 = vand.u32 127, %v16_v5  ;;  %v43_v22 = vmul.f32 0.0007936508, %v13_v4  ;;  %s73_s1 = sshll.u32 %s116_s0, 4  ;;  %s75_s19 = sshll.u32 %s149_s2, 4  ;;  %vm66_vm5 = vcmask 0   ;;  %s74_s1 = int_to_ptr.vmem [resolvable:$true] %s73_s1  ;;  %s76_s19 = int_to_ptr.hbm [resolvable:$true] %s75_s19 }
   0xb   :  { %20 = vadd.xlane.f32.xlu1 %v13_v4 }
   0xc   :  { %26 = vperm.xlu0 %88, %v15_v2  }
  0x76   :  { %v24_v7 = vpop.permute.xlu0 %23  ;;  %v19_v11 = vpop.xlane.xlu1 %18 }
  0x77   :  { %vm28_vm0 = vcmp.eq.s32.totalorder %v17_v6, %v24_v7  ;;  %v36_v12 = vmul.f32 0.0007936508, %v19_v11 }
  0x78   :  { %v30_v8 = vsel %vm28_vm0, %v12_v3, 0.0 }
  0x79   :  { %32 = vadd.xlane.f32.xlu2 %v30_v8 }
  0x7e   :  { %v27_v9 = vpop.permute.xlu0 %26  ;;  %v21_v17 = vpop.xlane.xlu1 %20 }
  0x7f   :  { %vm29_vm1 = vcmp.eq.s32.totalorder %v17_v6, %v27_v9  ;;  %v37_v20 = vmul.f32 0.0007936508, %v21_v17 }
  0x80   :  { %v31_v10 = vsel %vm29_vm1, %v13_v4, 0.0 }
  0x81   :  { %34 = vadd.xlane.f32.xlu2 %v31_v10 }
  0xec   :  { %v33_v13 = vpop.xlane.xlu2 %32 }
  0xed   :  { %v38_v15 = vmul.f32 0.89920634, %v33_v13 }
  0xef   :  { %v40_v16 = vadd.f32 %v38_v15, %v36_v12 }
  0xf1   :  { %v44_v18 = vsub.f32 %v40_v16, %v42_v14 }
  0xf3   :  { %v46_v19 = vsub.f32 -0.8087112, %v44_v18 }
  0xf4   :  { %v35_v21 = vpop.xlane.xlu2 %34 }
  0xf5   :  { %v39_v23 = vmul.f32 0.89920634, %v35_v21  ;;  %v50_v24 = vsel %vm48_vm2, %v46_v19, 0.0 }
  0xf6   :  { %v53_v29 = vsel %vm52_vm4, %v50_v24, 0.0 }
  0xf7   :  { %v41_v25 = vadd.f32 %v39_v23, %v37_v20 }
  0xf9   :  { %v45_v26 = vsub.f32 %v41_v25, %v43_v22 }
  0xfb   :  { %v47_v27 = vsub.f32 -0.8087112, %v45_v26 }
  0xfd   :  { %v51_v28 = vsel %vm49_vm3, %v47_v27, 0.0 }
  0xfe   :  { %v54_v30 = vsel %vm52_vm4, %v51_v28, 0.0 }
  0xff   :  { %v55_v31 = vadd.f32 %v54_v30, %v53_v29 }
 0x101   :  { %56 = vadd.xlane.f32.xlu0 %v55_v31 }
 0x174   :  { %v57_v32 = vpop.xlane.xlu0 %56 }
 0x175   :  { %v58_v33 = vrot.slane %v57_v32, 4 }
 0x177   :  { %v59_v34 = vadd.f32 %v58_v33, %v57_v32 }
 0x179   :  { %v60_v35 = vrot.slane %v59_v34, 2 }
 0x17b   :  { %v61_v36 = vadd.f32 %v60_v35, %v59_v34 }
 0x17d   :  { %v62_v37 = vrot.slane %v61_v36, 1 }
 0x17f   :  { %v63_v38 = vadd.f32 %v62_v37, %v61_v36 }
 0x181   :  { %84 = vpush %v63_v38 }
 0x1b2   :  { %s85_s20 = spop %84 }
 0x1b3   :  { %v65_v39 = vstv %s85_s20 }
 0x1b4   :  { %67 = vst.msk [vmem:[#allocation2] sm:$0x1] %vm66_vm5, %v65_v39 }
 0x1b5   :  { %78 = dma.vmem_to_hbm [thread:$0]  %s74_s1, 16, %s76_s19, [#allocation3]  }
 0x1b6   :  { %113 = dma.done.wait [#allocation3], 16  }
 0x1b7   :  { %114 = vsyncadd [#allocation3], 4294967280 }
 0x1b8   :  { %83 = vsyncpa [#allocation3], 1 }

</bundles_post_ra>
